<compile_context>
chip_gen: v5e
topology: v5e:2x2
jax: 0.10.0
libtpu: 0.0.40
codegen_flags: <defaults>
</compile_context>

<pallas_src>
import jax
import jax.numpy as jnp
from jax.experimental import pallas as pl
from jax.experimental.pallas import tpu as pltpu


def _image_embedding_kernel(patches_ref, w_ref, cls_ref, pos_cls_ref,
                            pos_tok_ref, out_ref):
    # patches_ref : (tb, N, K)   bf16 im2col patches for this batch block
    # w_ref       : (K, E)       bf16 conv weight as matmul matrix (grid-invariant)
    # cls_ref     : (tb, 1, E)   f32  class tokens for this batch block
    # pos_cls_ref : (1, 1, E)    f32  position-embedding row 0 (grid-invariant)
    # pos_tok_ref : (1, N, E)    f32  position rows 1.. with conv bias folded in
    # out_ref     : (tb, N+1, E) fused output
    tb, N, K = patches_ref.shape
    E = w_ref.shape[1]

    # One merged MXU matmul for the whole batch block.
    lhs = patches_ref[...].reshape(tb * N, K)
    tok = jnp.dot(lhs, w_ref[...], preferred_element_type=jnp.float32)  # (tb*N, E)
    tok = tok.reshape(tb, N, E) + pos_tok_ref[...]          # bias + pos (pre-folded)
    cls = cls_ref[...].astype(jnp.float32) + pos_cls_ref[...]           # (tb, 1, E)

    # Single contiguous, aligned store of the whole (tb, N+1, E) tile.
    out_ref[...] = jnp.concatenate([cls, tok], axis=1).astype(out_ref.dtype)


def _const_spec(shape, use_buffered):
    ndim = len(shape)
    index_map = lambda b, _n=ndim: (0,) * _n
    if use_buffered:
        return pl.BlockSpec(shape, index_map, pipeline_mode=pl.Buffered(1))
    return pl.BlockSpec(shape, index_map)


def image_embedding(x, conv_w, conv_b, class_token, pos_embedding,
                    *, patch_size, batch_block=None):
    """Fused ViT image embedding.

    x:             (B, C, H, W)
    conv_w:        (E, C, p, p)   Conv2d(kernel=stride=p) weight
    conv_b:        (E,)           Conv2d bias
    class_token:   (B, 1, E)
    pos_embedding: (1, N+1, E)    with N = (H/p)*(W/p)
    returns:       (B, N+1, E)
    """
    B, C, H, W = x.shape
    E = conv_w.shape[0]
    p = patch_size
    assert H % p == 0 and W % p == 0
    nh, nw = H // p, W // p
    N = nh * nw
    K = C * p * p
    assert class_token.shape == (B, 1, E)
    assert pos_embedding.shape == (1, N + 1, E)

    # ---- layout plumbing in the wrapper (no compute in the kernel for this) ----
    # im2col: (B, C, H, W) -> (B, N, C*p*p); feature index = c*p*p + dy*p + dx
    # matches Conv2d weight flattening.
    patches = x.reshape(B, C, nh, p, nw, p)
    patches = patches.transpose(0, 2, 4, 1, 3, 5).reshape(B, N, K)
    patches = patches.astype(jnp.bfloat16)                     # bf16 MXU path
    w_mat = conv_w.reshape(E, K).T.astype(jnp.bfloat16)        # (K, E) bf16

    pos_f32 = pos_embedding.astype(jnp.float32)
    pos_cls = pos_f32[:, 0:1, :]                                # (1, 1, E)
    pos_tok = pos_f32[:, 1:, :] + conv_b.astype(jnp.float32)[None, None, :]
    cls_f32 = class_token.astype(jnp.float32)

    out_dtype = x.dtype
    out_itemsize = jnp.dtype(out_dtype).itemsize

    def _tile_bytes(t):
        b = 0
        b += 2 * t * N * K * 2                    # patches, double buffered, bf16
        b += 2 * t * (N + 1) * E * out_itemsize   # output, double buffered
        b += 2 * t * 1 * E * 4                    # class tokens, double buffered
        b += K * E * 2 + (N + 1) * E * 4          # grid-invariant weight + pos
        return b

    # Conservative per-step budget: fits v7x's 64 MiB VMEM with headroom.
    budget = 40 * 1024 * 1024
    if batch_block is None:
        tb = min(B, 8)
        while tb > 1 and (
            B % tb != 0                       # must tile the batch exactly
            or (B > 1 and B // tb < 2)        # >= 2 grid steps for v7x 2-TC sharding
            or _tile_bytes(tb) > budget       # stay within VMEM budget
        ):
            tb -= 1
    else:
        tb = batch_block
    assert B % tb == 0, (B, tb)

    # Explicit scoped-VMEM limit: above v5e's 16 MiB default, within v7x's 64 MiB.
    vmem_limit = int(max(32 * 1024 * 1024, min(48 * 1024 * 1024, 2 * _tile_bytes(tb))))

    out_shape = jax.ShapeDtypeStruct((B, N + 1, E), out_dtype)

    def _run(use_buffered):
        in_specs = [
            pl.BlockSpec((tb, N, K), lambda b: (b, 0, 0)),        # patches
            _const_spec((K, E), use_buffered),                    # weight (resident)
            pl.BlockSpec((tb, 1, E), lambda b: (b, 0, 0)),        # class tokens
            _const_spec((1, 1, E), use_buffered),                 # pos row 0
            _const_spec((1, N, E), use_buffered),                 # pos rows 1.. (+bias)
        ]
        return pl.pallas_call(
            _image_embedding_kernel,
            out_shape=out_shape,
            grid_spec=pltpu.PrefetchScalarGridSpec(
                num_scalar_prefetch=0,
                grid=(B // tb,),
                in_specs=in_specs,
                out_specs=pl.BlockSpec((tb, N + 1, E), lambda b: (b, 0, 0)),
            ),
            compiler_params=pltpu.CompilerParams(
                dimension_semantics=("parallel",),
                vmem_limit_bytes=vmem_limit,
            ),
        )(patches, w_mat, cls_f32, pos_cls, pos_tok)

    try:
        return _run(hasattr(pl, "Buffered"))
    except Exception:
        # Fallback: identical kernel without the single-buffer pipeline hint.
        return _run(False)


if __name__ == "__main__":
    # Small, hardware-friendly shapes implied by the module:
    # batch=2, channels=3, image 32x32, patch 16 -> N=4 patches, E=128 (lane-dense).
    B, C, H, W = 2, 3, 32, 32
    P = 16
    E = 128
    N = (H // P) * (W // P)

    key = jax.random.PRNGKey(0)
    k1, k2, k3, k4, k5 = jax.random.split(key, 5)
    x = jax.random.normal(k1, (B, C, H, W), dtype=jnp.float32)
    conv_w = jax.random.normal(k2, (E, C, P, P), dtype=jnp.float32) * 0.02
    conv_b = jax.random.normal(k3, (E,), dtype=jnp.float32) * 0.02
    class_token = jax.random.normal(k4, (B, 1, E), dtype=jnp.float32)
    pos_embedding = jax.random.normal(k5, (1, N + 1, E), dtype=jnp.float32)

    out = image_embedding(x, conv_w, conv_b, class_token, pos_embedding, patch_size=P)
    out = jax.block_until_ready(out)

    # Independent reference: XLA conv -> flatten -> permute -> concat -> + pos (f32).
    ref_tok = jax.lax.conv_general_dilated(
        x, conv_w, window_strides=(P, P), padding="VALID",
        dimension_numbers=("NCHW", "OIHW", "NCHW"),
        precision=jax.lax.Precision.HIGHEST)
    ref_tok = ref_tok + conv_b[None, :, None, None]
    ref_tok = ref_tok.reshape(B, E, N).transpose(0, 2, 1)
    ref = jnp.concatenate([class_token, ref_tok], axis=1) + pos_embedding

    assert out.shape == (B, N + 1, E), out.shape
    max_err = float(jnp.max(jnp.abs(out.astype(jnp.float32) - ref)))
    # bf16 matmul inputs with f32 accumulation vs. pure-f32 reference.
    assert max_err < 5e-2, f"max abs err {max_err}"

    print("KERNEL_OK")
</pallas_src>

<mosaic_0001>
module attributes {stable_mosaic.version = 11 : i64} {
  func.func @_image_embedding_kernel(%arg0: i32, %arg1: memref<1x4x768xbf16, #tpu.memory_space<vmem>>, %arg2: memref<768x128xbf16, #tpu.memory_space<vmem>>, %arg3: memref<1x1x128xf32, #tpu.memory_space<vmem>>, %arg4: memref<1x1x128xf32, #tpu.memory_space<vmem>>, %arg5: memref<1x4x128xf32, #tpu.memory_space<vmem>>, %arg6: memref<1x5x128xf32, #tpu.memory_space<vmem>>) attributes {dimension_semantics = [#tpu.dimension_semantics<parallel>], iteration_bounds = array<i64: 2>, scalar_prefetch = 0 : i64, scratch_operands = 0 : i64, tpu.core_type = #tpu.core_type<tc>, window_params = [{transform_indices = @transform_0, window_bounds = array<i64: 1, 4, 768>}, {pipeline_mode = #tpu.pipeline_mode<synchronous>, transform_indices = @transform_1, window_bounds = array<i64: 768, 128>}, {transform_indices = @transform_2, window_bounds = array<i64: 1, 1, 128>}, {pipeline_mode = #tpu.pipeline_mode<synchronous>, transform_indices = @transform_3, window_bounds = array<i64: 1, 1, 128>}, {pipeline_mode = #tpu.pipeline_mode<synchronous>, transform_indices = @transform_4, window_bounds = array<i64: 1, 4, 128>}, {transform_indices = @transform_5, window_bounds = array<i64: 1, 5, 128>}]} {
    %c0 = arith.constant 0 : index
    %c0_0 = arith.constant 0 : index
    %c0_1 = arith.constant 0 : index
    %0 = vector.load %arg1[%c0, %c0_0, %c0_1] : memref<1x4x768xbf16, #tpu.memory_space<vmem>>, vector<1x4x768xbf16>
    %1 = vector.shape_cast %0 : vector<1x4x768xbf16> to vector<4x768xbf16>
    %c0_2 = arith.constant 0 : index
    %c0_3 = arith.constant 0 : index
    %2 = vector.load %arg2[%c0_2, %c0_3] : memref<768x128xbf16, #tpu.memory_space<vmem>>, vector<768x128xbf16>
    %cst = arith.constant dense<0.000000e+00> : vector<4x128xf32>
    %3 = tpu.matmul %1, %2, %cst {dimension_numbers = #tpu.dot_dimension_numbers<[1], [0], [0], [1], [0, 0, 1, 1], [], []>} : vector<4x768xbf16>, vector<768x128xbf16>, vector<4x128xf32> -> vector<4x128xf32>
    %4 = vector.shape_cast %3 : vector<4x128xf32> to vector<1x4x128xf32>
    %c0_4 = arith.constant 0 : index
    %c0_5 = arith.constant 0 : index
    %c0_6 = arith.constant 0 : index
    %5 = vector.load %arg5[%c0_4, %c0_5, %c0_6] : memref<1x4x128xf32, #tpu.memory_space<vmem>>, vector<1x4x128xf32>
    %6 = arith.addf %4, %5 : vector<1x4x128xf32>
    %c0_7 = arith.constant 0 : index
    %c0_8 = arith.constant 0 : index
    %c0_9 = arith.constant 0 : index
    %7 = vector.load %arg3[%c0_7, %c0_8, %c0_9] : memref<1x1x128xf32, #tpu.memory_space<vmem>>, vector<1x1x128xf32>
    %c0_10 = arith.constant 0 : index
    %c0_11 = arith.constant 0 : index
    %c0_12 = arith.constant 0 : index
    %8 = vector.load %arg4[%c0_10, %c0_11, %c0_12] : memref<1x1x128xf32, #tpu.memory_space<vmem>>, vector<1x1x128xf32>
    %9 = arith.addf %7, %8 : vector<1x1x128xf32>
    %10 = tpu.concatenate %9, %6 in 1 : vector<1x1x128xf32>, vector<1x4x128xf32> -> vector<1x5x128xf32>
    %c0_13 = arith.constant 0 : index
    %c0_14 = arith.constant 0 : index
    %c0_15 = arith.constant 0 : index
    %11 = vector.load %arg6[%c0_13, %c0_14, %c0_15] : memref<1x5x128xf32, #tpu.memory_space<vmem>>, vector<1x5x128xf32>
    tpu.vector_store %arg6[%c0_13, %c0_14, %c0_15], %10 {strides = array<i32>} : memref<1x5x128xf32, #tpu.memory_space<vmem>>, vector<1x5x128xf32>,
    return
  }
  func.func @transform_0(%arg0: i32) -> (i32, i32, i32) {
    %c0_i32 = arith.constant 0 : i32
    %c0_i32_0 = arith.constant 0 : i32
    %c0_i32_1 = arith.constant 0 : i32
    return %arg0, %c0_i32, %c0_i32_0 : i32, i32, i32
  }
  func.func @transform_1(%arg0: i32) -> (i32, i32) {
    %c0_i32 = arith.constant 0 : i32
    %c0_i32_0 = arith.constant 0 : i32
    %c0_i32_1 = arith.constant 0 : i32
    return %c0_i32, %c0_i32_0 : i32, i32
  }
  func.func @transform_2(%arg0: i32) -> (i32, i32, i32) {
    %c0_i32 = arith.constant 0 : i32
    %c0_i32_0 = arith.constant 0 : i32
    %c0_i32_1 = arith.constant 0 : i32
    return %arg0, %c0_i32, %c0_i32_0 : i32, i32, i32
  }
  func.func @transform_3(%arg0: i32) -> (i32, i32, i32) {
    %c0_i32 = arith.constant 0 : i32
    %c0_i32_0 = arith.constant 0 : i32
    %c0_i32_1 = arith.constant 0 : i32
    %c0_i32_2 = arith.constant 0 : i32
    return %c0_i32, %c0_i32_0, %c0_i32_1 : i32, i32, i32
  }
  func.func @transform_4(%arg0: i32) -> (i32, i32, i32) {
    %c0_i32 = arith.constant 0 : i32
    %c0_i32_0 = arith.constant 0 : i32
    %c0_i32_1 = arith.constant 0 : i32
    %c0_i32_2 = arith.constant 0 : i32
    return %c0_i32, %c0_i32_0, %c0_i32_1 : i32, i32, i32
  }
  func.func @transform_5(%arg0: i32) -> (i32, i32, i32) {
    %c0_i32 = arith.constant 0 : i32
    %c0_i32_0 = arith.constant 0 : i32
    %c0_i32_1 = arith.constant 0 : i32
    return %arg0, %c0_i32, %c0_i32_0 : i32, i32, i32
  }
}

module attributes {stable_mosaic.version = 11 : i64} {
  func.func @_image_embedding_kernel(%arg0: i32, %arg1: memref<1x4x768xbf16, #tpu.memory_space<vmem>>, %arg2: memref<768x128xbf16, #tpu.memory_space<vmem>>, %arg3: memref<1x1x128xf32, #tpu.memory_space<vmem>>, %arg4: memref<1x1x128xf32, #tpu.memory_space<vmem>>, %arg5: memref<1x4x128xf32, #tpu.memory_space<vmem>>, %arg6: memref<1x5x128xf32, #tpu.memory_space<vmem>>) attributes {dimension_semantics = [#tpu.dimension_semantics<parallel>], iteration_bounds = array<i64: 2>, scalar_prefetch = 0 : i64, scratch_operands = 0 : i64, tpu.core_type = #tpu.core_type<tc>, window_params = [{transform_indices = @transform_0, window_bounds = array<i64: 1, 4, 768>}, {pipeline_mode = #tpu.pipeline_mode<synchronous>, transform_indices = @transform_1, window_bounds = array<i64: 768, 128>}, {transform_indices = @transform_2, window_bounds = array<i64: 1, 1, 128>}, {pipeline_mode = #tpu.pipeline_mode<synchronous>, transform_indices = @transform_3, window_bounds = array<i64: 1, 1, 128>}, {pipeline_mode = #tpu.pipeline_mode<synchronous>, transform_indices = @transform_4, window_bounds = array<i64: 1, 4, 128>}, {transform_indices = @transform_5, window_bounds = array<i64: 1, 5, 128>}]} {
    %c0 = arith.constant 0 : index
    %c0_0 = arith.constant 0 : index
    %c0_1 = arith.constant 0 : index
    %0 = vector.load %arg1[%c0, %c0_0, %c0_1] : memref<1x4x768xbf16, #tpu.memory_space<vmem>>, vector<1x4x768xbf16>
    %1 = vector.shape_cast %0 : vector<1x4x768xbf16> to vector<4x768xbf16>
    %c0_2 = arith.constant 0 : index
    %c0_3 = arith.constant 0 : index
    %2 = vector.load %arg2[%c0_2, %c0_3] : memref<768x128xbf16, #tpu.memory_space<vmem>>, vector<768x128xbf16>
    %cst = arith.constant dense<0.000000e+00> : vector<4x128xf32>
    %3 = tpu.matmul %1, %2, %cst {dimension_numbers = #tpu.dot_dimension_numbers<[1], [0], [0], [1], [0, 0, 1, 1], [], []>} : vector<4x768xbf16>, vector<768x128xbf16>, vector<4x128xf32> -> vector<4x128xf32>
    %4 = vector.shape_cast %3 : vector<4x128xf32> to vector<1x4x128xf32>
    %c0_4 = arith.constant 0 : index
    %c0_5 = arith.constant 0 : index
    %c0_6 = arith.constant 0 : index
    %5 = vector.load %arg5[%c0_4, %c0_5, %c0_6] : memref<1x4x128xf32, #tpu.memory_space<vmem>>, vector<1x4x128xf32>
    %6 = arith.addf %4, %5 : vector<1x4x128xf32>
    %c0_7 = arith.constant 0 : index
    %c0_8 = arith.constant 0 : index
    %c0_9 = arith.constant 0 : index
    %7 = vector.load %arg3[%c0_7, %c0_8, %c0_9] : memref<1x1x128xf32, #tpu.memory_space<vmem>>, vector<1x1x128xf32>
    %c0_10 = arith.constant 0 : index
    %c0_11 = arith.constant 0 : index
    %c0_12 = arith.constant 0 : index
    %8 = vector.load %arg4[%c0_10, %c0_11, %c0_12] : memref<1x1x128xf32, #tpu.memory_space<vmem>>, vector<1x1x128xf32>
    %9 = arith.addf %7, %8 : vector<1x1x128xf32>
    %10 = tpu.concatenate %9, %6 in 1 : vector<1x1x128xf32>, vector<1x4x128xf32> -> vector<1x5x128xf32>
    %c0_13 = arith.constant 0 : index
    %c0_14 = arith.constant 0 : index
    %c0_15 = arith.constant 0 : index
    %11 = vector.load %arg6[%c0_13, %c0_14, %c0_15] : memref<1x5x128xf32, #tpu.memory_space<vmem>>, vector<1x5x128xf32>
    tpu.vector_store %arg6[%c0_13, %c0_14, %c0_15], %10 {strides = array<i32>} : memref<1x5x128xf32, #tpu.memory_space<vmem>>, vector<1x5x128xf32>,
    return
  }
  func.func @transform_0(%arg0: i32) -> (i32, i32, i32) {
    %c0_i32 = arith.constant 0 : i32
    %c0_i32_0 = arith.constant 0 : i32
    %c0_i32_1 = arith.constant 0 : i32
    return %arg0, %c0_i32, %c0_i32_0 : i32, i32, i32
  }
  func.func @transform_1(%arg0: i32) -> (i32, i32) {
    %c0_i32 = arith.constant 0 : i32
    %c0_i32_0 = arith.constant 0 : i32
    %c0_i32_1 = arith.constant 0 : i32
    return %c0_i32, %c0_i32_0 : i32, i32
  }
  func.func @transform_2(%arg0: i32) -> (i32, i32, i32) {
    %c0_i32 = arith.constant 0 : i32
    %c0_i32_0 = arith.constant 0 : i32
    %c0_i32_1 = arith.constant 0 : i32
    return %arg0, %c0_i32, %c0_i32_0 : i32, i32, i32
  }
  func.func @transform_3(%arg0: i32) -> (i32, i32, i32) {
    %c0_i32 = arith.constant 0 : i32
    %c0_i32_0 = arith.constant 0 : i32
    %c0_i32_1 = arith.constant 0 : i32
    %c0_i32_2 = arith.constant 0 : i32
    return %c0_i32, %c0_i32_0, %c0_i32_1 : i32, i32, i32
  }
  func.func @transform_4(%arg0: i32) -> (i32, i32, i32) {
    %c0_i32 = arith.constant 0 : i32
    %c0_i32_0 = arith.constant 0 : i32
    %c0_i32_1 = arith.constant 0 : i32
    %c0_i32_2 = arith.constant 0 : i32
    return %c0_i32, %c0_i32_0, %c0_i32_1 : i32, i32, i32
  }
  func.func @transform_5(%arg0: i32) -> (i32, i32, i32) {
    %c0_i32 = arith.constant 0 : i32
    %c0_i32_0 = arith.constant 0 : i32
    %c0_i32_1 = arith.constant 0 : i32
    return %arg0, %c0_i32, %c0_i32_0 : i32, i32, i32
  }
}

</mosaic_0001>

<bundles_post_ra>
// kernel: tpu_custom_call.1
= control target key start
LH: loop header
LB: loop body
LE: loop exit
PB: predicated region body
PF: predicated region fallthrough
CT: control target
= control target key end

     0   :  { %10 = vsyncpa [#allocation3], 0  ;;  %s1585_s0 = inlined_call_operand.hbm [shape: bf16[2,4,768], index: 0, kind: input, shape index: {}]   ;;  %s1586_s1 = inlined_call_operand.hbm [shape: bf16[768,128], index: 1, kind: input, shape index: {}]   ;;  %s1587_s2 = inlined_call_operand.hbm [shape: f32[2,1,128], index: 2, kind: input, shape index: {}]   ;;  %s1588_s3 = inlined_call_operand.vmem [shape: f32[1,1,128], index: 3, kind: input, shape index: {}]   ;;  %s1589_s4 = inlined_call_operand.hbm [shape: f32[1,4,128], index: 4, kind: input, shape index: {}]   ;;  %s1590_s5 = inlined_call_operand.vmem [shape: f32[2,5,128], index: 5, kind: output, shape index: {}]  }
   0x1   :  { %12 = vsyncpa [#allocation3 + $0x1], 0 }
   0x2   :  { %13 = vsyncpa [#allocation5], 0  ;;  %s1422_s18 = smov 0   ;;  %s1424_s19 = smov 0  }
   0x3   :  { %s1426_s20 = smov 0   ;;  %s1428_s21 = smov 0  }
   0x4 LB: > { %s176_s24 = sshll.u32 %s1586_s1, 4  ;;  %s1444_s25 = sadd.s32 4294967295, %s1386_s21   ;;  %s1386_s21 = sphi %s1428_s21, %s1600_s21   ;;  %s1382_s20 = sphi %s1426_s20, %s1599_s20   ;;  %s1378_s19 = sphi %s1424_s19, %s1598_s19   ;;  %s1374_s18 = sphi %s1422_s18, %s1597_s18   ;;  %s177_s24 = int_to_ptr.hbm [resolvable:$true] %s176_s24 }
   0x5   : > { %p899_p0 = scmp.ge.s32.totalorder %s1386_s21, 1  ;;  %p40_p1 = scmp.eq.s32.totalorder %s1444_s25, 0 }
   0x6   : > { %p165_p2 = scmp.lt.s32.totalorder %s1386_s21, 3  ;;  %s1388_s27 = smov [#allocation4]  }
   0x7   : > { %s178_s28 = sshll.u32 %s1388_s27, 4  ;;  %s1389_s30 = smov 64   ;;  %s179_s28 = int_to_ptr.vmem [resolvable:$true] %s178_s28 }
   0x8   : > { %p1449_p3 = pnand %p899_p0, %p165_p2  ;;  %s1390_s6 = smov 4  }
   0x9   : > { %s1464_s7 = sadd.s32 1, %s1386_s21   ;;  %s26_s9 = sadd.s32 1, %s1382_s20 }
   0xa   : > { %p1165_p4 = pneg %p1449_p3  ;;  %s23_s8 = ssub.s32 %s1386_s21, %s1464_s7 }
   0xb   : > { %p24_p6 = scmp.eq.s32.totalorder %s23_s8, 0  ;;  %p33_p7 = scmp.ne.s32.totalorder %s1382_s20, %s1378_s19 }
   0xc   : > { %p1457_p5 = pnand %p1165_p4, %p40_p1  ;;  %p34_p8 = scmp.eq.s32.totalorder %s1386_s21, 0 }
   0xd   : > { %p39_p9 = scmp.ne.s32.totalorder %s1378_s19, %s1374_s18  ;;  %p1181_p12 = scmp.lt.s32.totalorder %s1386_s21, 2 }
   0xe   : > { %1168 = dma.hbm_to_vmem [thread:$0]  (!%p1457_p5), %s177_s24, 6144, %s179_s28, [#allocation5], %s1389_s30, %s1389_s30, %s1390_s6  }
   0xf   : > { %s1474_s10 = scalar_select %p24_p6, %s1382_s20, %s26_s9  }
  0x10   : > { %p35_p10 = por %p34_p8, %p33_p7  ;;  %p1478_p11 = por %p40_p1, %p39_p9 }
  0x11   : > { %s207_s12 = sand.u32 1, %s1386_s21   ;;  %s1591_s13 = sand.u32 1, %s1382_s20  }
  0x12   : > { %s1150_s14 = smul.u32 12, %s1591_s13  ;;  %p1487_p13 = pnand %p1181_p12, %p35_p10 }
  0x13   : > { %s1151_s16 = smul.u32 12, %s1386_s21  ;;  %s194_s22 = sshll.u32 %s1589_s4, 4  ;;  %s195_s22 = int_to_ptr.hbm [resolvable:$true] %s194_s22 }
  0x14   : > { %s211_s28 = scalar_lea.vmem [#allocation2], %s1150_s14  ;;  %s1498_s8 = scalar_lea.sflag [#allocation3], %s207_s12 }
  0x15   : > { %s216_s27 = scalar_lea.hbm %s1585_s0, %s1151_s16  ;;  %s220_s30 = sshll.u32 %s211_s28, 4  ;;  %s221_s30 = int_to_ptr.vmem [resolvable:$true] %s220_s30 }
  0x16   : > { %s218_s6 = sshll.u32 %s216_s27, 4  ;;  %p1254_p2 = pneg %p1487_p13  ;;  %s219_s6 = int_to_ptr.hbm [resolvable:$true] %s218_s6 }
  0x17   : > { %s1250_s9 = sshra.s32 %s219_s6, 4  ;;  %s1257_s14 = scalar_lea.hbm %s1585_s0, 24  ;;  %s1251_s9 = int_to_ptr.hbm [resolvable:$true] %s1250_s9 }
  0x18   : > { %s1252_s13 = scalar_lea.hbm %s1251_s9, 12  ;;  %p1258_p7 = scmp.lt.s32.totalorder %s1251_s9, %s1585_s0 }
  0x19   : > { %p1253_p0 = scmp.ne.s32.totalorder %s1251_s9, %s1252_s13  ;;  %p1259_p8 = scmp.lt.s32.totalorder %s1257_s14, %s1252_s13 }
  0x1b   : > { %p1255_p4 = pnand %p1254_p2, %p1253_p0  ;;  %p1260_p9 = por %p1259_p8, %p1258_p7 }
  0x1d   : > { %p1256_p6 = pneg %p1255_p4 }
  0x1f   : > { %p1261_p10 = pnand %p1260_p9, %p1256_p6 }
  0x21   : > { %1264 = shalt.err (!%p1261_p10)
}
  0x22   : > { %1175 = dma.hbm_to_vmem [thread:$0]  (!%p1487_p13), %s219_s6, 192, %s221_s30, %s1498_s8  }
  0x23   : > { %s1391_s12 = smov [#allocation7]   ;;  %s233_s17 = scalar_lea.hbm %s1587_s2, %s1386_s21 }
  0x24   : > { %s196_s24 = sshll.u32 %s1391_s12, 4  ;;  %s235_s9 = sshll.u32 %s233_s17, 4  ;;  %s197_s24 = int_to_ptr.vmem [resolvable:$true] %s196_s24  ;;  %s236_s9 = int_to_ptr.hbm [resolvable:$true] %s235_s9 }
  0x25   : > { %1171 = dma.hbm_to_vmem [thread:$0]  (!%p1457_p5), %s195_s22, 64, %s197_s24, [#allocation5]  }
  0x26   : > { %s1596_s13 = sand.u32 1, %s1382_s20   ;;  %s1310_s18 = sshra.s32 %s236_s9, 4  ;;  %s1311_s18 = int_to_ptr.hbm [resolvable:$true] %s1310_s18 }
  0x27   : > { %s230_s16 = scalar_lea.vmem [#allocation6], %s1596_s13  ;;  %s1312_s23 = scalar_lea.hbm %s1311_s18, 1 }
  0x28   : > { %s237_s14 = sshll.u32 %s230_s16, 4  ;;  %p1313_p12 = scmp.ne.s32.totalorder %s1311_s18, %s1312_s23  ;;  %s238_s14 = int_to_ptr.vmem [resolvable:$true] %s237_s14 }
  0x29   : > { %s1317_s21 = scalar_lea.hbm %s1587_s2, 2  ;;  %p1318_p5 = scmp.lt.s32.totalorder %s1311_s18, %s1587_s2 }
  0x2a   : > { %p1315_p0 = pnand %p1313_p12, %p1254_p2  ;;  %p1319_p6 = scmp.lt.s32.totalorder %s1317_s21, %s1312_s23 }
  0x2c   : > { %p1316_p4 = pneg %p1315_p0  ;;  %p1320_p7 = por %p1319_p6, %p1318_p5 }
  0x2e   : > { %p1321_p8 = pnand %p1320_p7, %p1316_p4 }
  0x30   : > { %1324 = shalt.err (!%p1321_p8)
}
  0x31   : > { %1178 = dma.hbm_to_vmem [thread:$0]  (!%p1487_p13), %s236_s9, 16, %s238_s14, %s1498_s8  }
  0x32   : > { %246 = sbr.rel (%p1449_p3) target bundleno = 262 (0x106), region = 40  ;;  %s248_s22 = sand.u32 (!%p1449_p3), 1, %s1444_s25  }
  0x33   : > { %s250_s24 = sand.u32 (!%p1449_p3), 1, %s1378_s19   ;;  %s249_s28 = scalar_lea.sflag (!%p1449_p3), [#allocation3], %s248_s22 }
  0x34   : > { %s1538_s27 = smul.u32 (!%p1449_p3), 12, %s250_s24 }
  0x36   : > { %s252_s17 = scalar_lea.vmem (!%p1449_p3), [#allocation2], %s1538_s27 }
  0x37   : > { %1357 = dma.done.wait (%p1478_p11), %s249_s28, 192  }
  0x38   : > { %1359 = vsyncadd (%p1478_p11), %s249_s28, 4294967104 }
  0x39   : > { %1361 = dma.done.wait (%p40_p1), [#allocation5], 6144  }
  0x3a   : > { %1363 = vsyncadd (%p40_p1), [#allocation5], 4294961152  ;;  %s1549_s26 = scalar_lea.vmem [#allocation6], %s250_s24 }
  0x3b   : > { %1365 = dma.done.wait (%p1478_p11), %s249_s28, 16  }
  0x3c   : > { %1367 = vsyncadd (%p1478_p11), %s249_s28, 4294967280 }
  0x3d   : > { %1369 = dma.done.wait (%p40_p1), [#allocation5], 64  }
  0x3e   : > { %1371 = vsyncadd (%p40_p1), [#allocation5], 4294967232  ;;  %v1109_v0 = vld [vmem:[#allocation4 + $0x38] sm:$0xff]  ;;  %v1108_v2 = vld [vmem:[#allocation4 + $0x30] sm:$0xff]  ;;  %p302_p1 = scmp.lt.s32.totalorder %s1444_s25, 1  ;;  %vm795_vm0 = vcmask 1040384  }
  0x3f   : > { %v1117_v1 = vld [vmem:[#allocation4 + $0x78] sm:$0xff]  ;;  %709 = vmatpush.bf16.msra.mxu0 %v1109_v0  ;;  %v1116_v3 = vld [vmem:[#allocation4 + $0x70] sm:$0xff]  ;;  %v1107_v8 = vld [vmem:[#allocation4 + $0x28] sm:$0xff] }
  0x40   : > { %722 = vmatpush.bf16.msra.mxu1 %v1117_v1  ;;  %v1125_v4 = vld [vmem:[#allocation4 + $0xb8] sm:$0xff]  ;;  %v1124_v6 = vld [vmem:[#allocation4 + $0xb0] sm:$0xff]  ;;  %v1115_v9 = vld [vmem:[#allocation4 + $0x68] sm:$0xff]  ;;  %s1602_s25 = smov (!%p302_p1, %s1444_s25), 1 }
  0x41   : > { %v1133_v5 = vld [vmem:[#allocation4 + $0xf8] sm:$0xff]  ;;  %735 = vmatpush.bf16.msra.mxu2 %v1125_v4  ;;  %v1132_v7 = vld [vmem:[#allocation4 + $0xf0] sm:$0xff]  ;;  %v1123_v10 = vld [vmem:[#allocation4 + $0xa8] sm:$0xff]  ;;  %s907_s8 = sshll.u32 %s1602_s25, 3 }
  0x42   : > { %748 = vmatpush.bf16.msra.mxu3 %v1133_v5  ;;  %v1131_v11 = vld [vmem:[#allocation4 + $0xe8] sm:$0xff]  ;;  %v1106_v12 = vld [vmem:[#allocation4 + $0x20] sm:$0xff]  ;;  %v1105_v17 = vld [vmem:[#allocation4 + $0x18] sm:$0xff]  ;;  %s305_s16 = scalar_lea.vmem %s1590_s5, %s907_s8 }
  0x43   : > { %710 = vmatpush.bf16.msra.mxu0 %v1108_v2  ;;  %v1114_v13 = vld [vmem:[#allocation4 + $0x60] sm:$0xff]  ;;  %v306_v14 = vld [vmem:[%s252_s17] sm:$0xff]  ;;  %v307_v25 = vld [vmem:[%s252_s17 + $0x8] sm:$0xf] }
  0x44   : > { %723 = vmatpush.bf16.msra.mxu1 %v1116_v3  ;;  %v1122_v15 = vld [vmem:[#allocation4 + $0xa0] sm:$0xff]  ;;  %405 = vst [vmem:[#allocation1] ss:$4 sm:$0xff] %v306_v14  ;;  %v1113_v18 = vld [vmem:[#allocation4 + $0x58] sm:$0xff]  ;;  %v1104_v21 = vld [vmem:[#allocation4 + $0x10] sm:$0xff] }
  0x45   : > { %736 = vmatpush.bf16.msra.mxu2 %v1124_v6  ;;  %v1130_v16 = vld [vmem:[#allocation4 + $0xe0] sm:$0xff]  ;;  %v1121_v19 = vld [vmem:[#allocation4 + $0x98] sm:$0xff]  ;;  %v1112_v22 = vld [vmem:[#allocation4 + $0x50] sm:$0xff]  ;;  %408 = vst [vmem:[#allocation1 + $0x20] ss:$4 sm:$0xff] %v307_v25 }
  0x46   : > { %749 = vmatpush.bf16.msra.mxu3 %v1132_v7  ;;  %v1129_v20 = vld [vmem:[#allocation4 + $0xd8] sm:$0xff]  ;;  %v1120_v23 = vld [vmem:[#allocation4 + $0x90] sm:$0xff]  ;;  %v1103_v26 = vld [vmem:[#allocation4 + $0x8] sm:$0xff] }
  0x47   : > { %711 = vmatpush.bf16.msra.mxu0 %v1107_v8  ;;  %v1128_v24 = vld [vmem:[#allocation4 + $0xd0] sm:$0xff]  ;;  %v1111_v27 = vld [vmem:[#allocation4 + $0x48] sm:$0xff]  ;;  %v1102_v30 = vld [vmem:[#allocation4] sm:$0xff] }
  0x48   : > { %724 = vmatpush.bf16.msra.mxu1 %v1115_v9  ;;  %v1119_v28 = vld [vmem:[#allocation4 + $0x88] sm:$0xff]  ;;  %v1110_v31 = vld [vmem:[#allocation4 + $0x40] sm:$0xff]  ;;  %v1141_v32 = vld [vmem:[#allocation4 + $0x138] sm:$0xff] }
  0x49   : > { %737 = vmatpush.bf16.msra.mxu2 %v1123_v10  ;;  %v1127_v29 = vld [vmem:[#allocation4 + $0xc8] sm:$0xff]  ;;  %v1149_v33 = vld [vmem:[#allocation4 + $0x178] sm:$0xff]  ;;  %v1118_v34 = vld [vmem:[#allocation4 + $0x80] sm:$0xff] }
  0x4a   : > { %750 = vmatpush.bf16.msra.mxu3 %v1131_v11  ;;  %v1126_v35 = vld [vmem:[#allocation4 + $0xc0] sm:$0xff]  ;;  %v1140_v38 = vld [vmem:[#allocation4 + $0x130] sm:$0xff]  ;;  %v1139_v42 = vld [vmem:[#allocation4 + $0x128] sm:$0xff] }
  0x4b   : > { %712 = vmatpush.bf16.msra.mxu0 %v1106_v12  ;;  %v409_v36 = vld.sshfl [vmem:[#allocation1] sm:$0xff pattern:$0x73625140]  ;;  %v410_v37 = vld.sshfl [vmem:[#allocation1 + $0x8] sm:$0xff pattern:$0x73625140] }
  0x4c   : > { %725 = vmatpush.bf16.msra.mxu1 %v1114_v13  ;;  %v1148_v39 = vld [vmem:[#allocation4 + $0x170] sm:$0xff]  ;;  %v412_v41 = vld.sshfl [vmem:[#allocation1 + $0x18] sm:$0xff pattern:$0x73625140]  ;;  %v1147_v43 = vld [vmem:[#allocation4 + $0x168] sm:$0xff] }
  0x4d   : > { %738 = vmatpush.bf16.msra.mxu2 %v1122_v15  ;;  %v411_v40 = vld.sshfl [vmem:[#allocation1 + $0x10] sm:$0xff pattern:$0x73625140]  ;;  %v1138_v44 = vld [vmem:[#allocation4 + $0x120] sm:$0xff]  ;;  %v1137_v46 = vld [vmem:[#allocation4 + $0x118] sm:$0xff] }
  0x4e   : > { %751 = vmatpush.bf16.msra.mxu3 %v1130_v16  ;;  %v1146_v45 = vld [vmem:[#allocation4 + $0x160] sm:$0xff]  ;;  %v1145_v47 = vld [vmem:[#allocation4 + $0x158] sm:$0xff]  ;;  %v1136_v48 = vld [vmem:[#allocation4 + $0x110] sm:$0xff] }
  0x4f   : > { %713 = vmatpush.bf16.msra.mxu0 %v1105_v17  ;;  %v1144_v49 = vld [vmem:[#allocation4 + $0x150] sm:$0xff]  ;;  %v1135_v50 = vld [vmem:[#allocation4 + $0x108] sm:$0xff]  ;;  %v1134_v52 = vld [vmem:[#allocation4 + $0x100] sm:$0xff] }
  0x50   : > { %726 = vmatpush.bf16.msra.mxu1 %v1113_v18  ;;  %v1143_v51 = vld [vmem:[#allocation4 + $0x148] sm:$0xff]  ;;  %v1142_v53 = vld [vmem:[#allocation4 + $0x140] sm:$0xff] }
  0x51   : > { %739 = vmatpush.bf16.msra.mxu2 %v1121_v19  ;;  %v413_v54 = vld.sshfl [vmem:[#allocation1 + $0x20] sm:$0xff pattern:$0x73625140]  ;;  %v414_v55 = vld.sshfl [vmem:[#allocation1 + $0x28] sm:$0xff pattern:$0x73625140] }
  0x52   : > { %752 = vmatpush.bf16.msra.mxu3 %v1129_v20  ;;  %v787_v6 = vld [vmem:[#allocation7] sm:$0xf]  ;;  %v789_v7 = vld [vmem:[%s1549_s26] sm:$0x1] }
  0x53   : > { %714 = vmatpush.bf16.msra.mxu0 %v1104_v21  ;;  %v790_v8 = vld [vmem:[%s1588_s3] sm:$0x1] }
  0x54   : > { %727 = vmatpush.bf16.msra.mxu1 %v1112_v22  ;;  %v791_v11 = vadd.f32 %v790_v8, %v789_v7 }
  0x55   : > { %740 = vmatpush.bf16.msra.mxu2 %v1120_v23 }
  0x56   : > { %753 = vmatpush.bf16.msra.mxu3 %v1128_v24 }
  0x57   : > { %715 = vmatpush.bf16.msra.mxu0 %v1103_v26 }
  0x58   : > { %728 = vmatpush.bf16.msra.mxu1 %v1111_v27 }
  0x59   : > { %741 = vmatpush.bf16.msra.mxu2 %v1119_v28 }
  0x5a   : > { %754 = vmatpush.bf16.msra.mxu3 %v1127_v29 }
  0x5b   : > { %716 = vmatpush.bf16.msra.mxu0 %v1102_v30 }
  0x5c   : > { %729 = vmatpush.bf16.msra.mxu1 %v1110_v31 }
  0x5d   : > { %742 = vmatpush.bf16.msra.mxu2 %v1118_v34 }
  0x5e   : > { %755 = vmatpush.bf16.msra.mxu3 %v1126_v35  ;;  %717 = vmatmul.bf16.vlgmr.msra.gmra.mxu0 %v409_v36 }
  0x5f   : > { %761 = vmatpush.bf16.msrb.mxu0 %v1141_v32  ;;  %730 = vmatmul.bf16.vlgmr.msra.gmra.mxu1 %v410_v37 }
  0x60   : > { %774 = vmatpush.bf16.msrb.mxu1 %v1149_v33  ;;  %743 = vmatmul.bf16.vlgmr.msra.gmra.mxu2 %v411_v40 }
  0x61   : > { %756 = vmatmul.bf16.vlgmr.msra.gmra.mxu3 %v412_v41 }
  0x63   : > { %762 = vmatpush.bf16.msrb.mxu0 %v1140_v38 }
  0x64   : > { %775 = vmatpush.bf16.msrb.mxu1 %v1148_v39 }
  0x67   : > { %763 = vmatpush.bf16.msrb.mxu0 %v1139_v42 }
  0x68   : > { %776 = vmatpush.bf16.msrb.mxu1 %v1147_v43 }
  0x6b   : > { %764 = vmatpush.bf16.msrb.mxu0 %v1138_v44 }
  0x6c   : > { %777 = vmatpush.bf16.msrb.mxu1 %v1146_v45 }
  0x6f   : > { %765 = vmatpush.bf16.msrb.mxu0 %v1137_v46 }
  0x70   : > { %778 = vmatpush.bf16.msrb.mxu1 %v1145_v47 }
  0x73   : > { %766 = vmatpush.bf16.msrb.mxu0 %v1136_v48 }
  0x74   : > { %779 = vmatpush.bf16.msrb.mxu1 %v1144_v49 }
  0x77   : > { %767 = vmatpush.bf16.msrb.mxu0 %v1135_v50 }
  0x78   : > { %780 = vmatpush.bf16.msrb.mxu1 %v1143_v51 }
  0x7b   : > { %768 = vmatpush.bf16.msrb.mxu0 %v1134_v52 }
  0x7c   : > { %781 = vmatpush.bf16.msrb.mxu1 %v1142_v53 }
  0x7e   : > { %769 = vmatmul.bf16.vlgmr.msrb.gmra.mxu0 %v413_v54 }
  0x7f   : > { %782 = vmatmul.bf16.vlgmr.msrb.gmra.mxu1 %v414_v55 }
  0xdb   : > { %v718_v56 = vpop.f32.mrf.mxu0 }
  0xdc   : > { %v731_v57 = vpop.f32.mrf.mxu1 }
  0xdd   : > { %v732_v0 = vadd.f32 %v731_v57, %v718_v56 }
  0xe3   : > { %v720_v58 = vpop.f32.mrf.mxu0  ;;  %v744_v60 = vpop.f32.mrf.mxu2 }
  0xe4   : > { %v733_v59 = vpop.f32.mrf.mxu1  ;;  %v757_v61 = vpop.f32.mrf.mxu3  ;;  %v745_v1 = vadd.f32 %v744_v60, %v732_v0 }
  0xe6   : > { %v758_v2 = vadd.f32 %v757_v61, %v745_v1 }
  0xeb   : > { %v746_v62 = vpop.f32.mrf.mxu2 }
  0xec   : > { %v759_v63 = vpop.f32.mrf.mxu3 }
  0xfb   : > { %v770_v3 = vpop.f32.mrf.mxu0 }
  0xfc   : > { %v783_v4 = vpop.f32.mrf.mxu1  ;;  %v771_v5 = vadd.f32 %v770_v3, %v758_v2 }
  0xfe   : > { %v784_v9 = vadd.f32 %v783_v4, %v771_v5 }
 0x100   : > { %v788_v10 = vadd.f32 %v787_v6, %v784_v9 }
 0x102   : > { %v793_v12 = vrot.slane %v788_v10, 7 }
 0x103   : > { %v772_v13 = vpop.f32.mrf.mxu0 }
 0x104   : > { %v785_v14 = vpop.f32.mrf.mxu1  ;;  %v796_v15 = vsel %vm795_vm0, %v791_v11, %v793_v12 }
 0x105   : > { %797 = vst [vmem:[%s305_s16] sm:$0x1f] %v796_v15 }
 0x106 PF: > { %p16_p3 = scmp.ge.s32.totalorder %s1464_s7, 4   ;;  %s1597_s18 = smov %s1378_s19 }
 0x107   : > { %s1598_s19 = smov %s1382_s20  ;;  %s1599_s20 = smov %s1474_s10 }
 0x108   : > { %s1600_s21 = smov %s1464_s7  ;;  %18 = sbr.rel (!%p16_p3) target bundleno = 4 (0x4), region = 100 }
 0x10d   :  { %817 = vsyncpa [#allocation3], 1 }
 0x10e   :  { %819 = vsyncpa [#allocation3 + $0x1], 1 }
 0x10f   :  { %820 = vsyncpa [#allocation5], 1 }

// kernel: tpu_custom_call.1
= control target key start
LH: loop header
LB: loop body
LE: loop exit
PB: predicated region body
PF: predicated region fallthrough
CT: control target
= control target key end

     0   :  { %10 = vsyncpa [#allocation3], 0  ;;  %s1585_s0 = inlined_call_operand.hbm [shape: bf16[2,4,768], index: 0, kind: input, shape index: {}]   ;;  %s1586_s1 = inlined_call_operand.hbm [shape: bf16[768,128], index: 1, kind: input, shape index: {}]   ;;  %s1587_s2 = inlined_call_operand.hbm [shape: f32[2,1,128], index: 2, kind: input, shape index: {}]   ;;  %s1588_s3 = inlined_call_operand.vmem [shape: f32[1,1,128], index: 3, kind: input, shape index: {}]   ;;  %s1589_s4 = inlined_call_operand.hbm [shape: f32[1,4,128], index: 4, kind: input, shape index: {}]   ;;  %s1590_s5 = inlined_call_operand.vmem [shape: f32[2,5,128], index: 5, kind: output, shape index: {}]  }
   0x1   :  { %12 = vsyncpa [#allocation3 + $0x1], 0 }
   0x2   :  { %13 = vsyncpa [#allocation5], 0  ;;  %s1422_s18 = smov 0   ;;  %s1424_s19 = smov 0  }
   0x3   :  { %s1426_s20 = smov 0   ;;  %s1428_s21 = smov 0  }
   0x4 LB: > { %s176_s24 = sshll.u32 %s1586_s1, 4  ;;  %s1444_s25 = sadd.s32 4294967295, %s1386_s21   ;;  %s1386_s21 = sphi %s1428_s21, %s1600_s21   ;;  %s1382_s20 = sphi %s1426_s20, %s1599_s20   ;;  %s1378_s19 = sphi %s1424_s19, %s1598_s19   ;;  %s1374_s18 = sphi %s1422_s18, %s1597_s18   ;;  %s177_s24 = int_to_ptr.hbm [resolvable:$true] %s176_s24 }
   0x5   : > { %p899_p0 = scmp.ge.s32.totalorder %s1386_s21, 1  ;;  %p40_p1 = scmp.eq.s32.totalorder %s1444_s25, 0 }
   0x6   : > { %p165_p2 = scmp.lt.s32.totalorder %s1386_s21, 3  ;;  %s1388_s27 = smov [#allocation4]  }
   0x7   : > { %s178_s28 = sshll.u32 %s1388_s27, 4  ;;  %s1389_s30 = smov 64   ;;  %s179_s28 = int_to_ptr.vmem [resolvable:$true] %s178_s28 }
   0x8   : > { %p1449_p3 = pnand %p899_p0, %p165_p2  ;;  %s1390_s6 = smov 4  }
   0x9   : > { %s1464_s7 = sadd.s32 1, %s1386_s21   ;;  %s26_s9 = sadd.s32 1, %s1382_s20 }
   0xa   : > { %p1165_p4 = pneg %p1449_p3  ;;  %s23_s8 = ssub.s32 %s1386_s21, %s1464_s7 }
   0xb   : > { %p24_p6 = scmp.eq.s32.totalorder %s23_s8, 0  ;;  %p33_p7 = scmp.ne.s32.totalorder %s1382_s20, %s1378_s19 }
   0xc   : > { %p1457_p5 = pnand %p1165_p4, %p40_p1  ;;  %p34_p8 = scmp.eq.s32.totalorder %s1386_s21, 0 }
   0xd   : > { %p39_p9 = scmp.ne.s32.totalorder %s1378_s19, %s1374_s18  ;;  %p1181_p12 = scmp.lt.s32.totalorder %s1386_s21, 2 }
   0xe   : > { %1168 = dma.hbm_to_vmem [thread:$0]  (!%p1457_p5), %s177_s24, 6144, %s179_s28, [#allocation5], %s1389_s30, %s1389_s30, %s1390_s6  }
   0xf   : > { %s1474_s10 = scalar_select %p24_p6, %s1382_s20, %s26_s9  }
  0x10   : > { %p35_p10 = por %p34_p8, %p33_p7  ;;  %p1478_p11 = por %p40_p1, %p39_p9 }
  0x11   : > { %s207_s12 = sand.u32 1, %s1386_s21   ;;  %s1591_s13 = sand.u32 1, %s1382_s20  }
  0x12   : > { %s1150_s14 = smul.u32 12, %s1591_s13  ;;  %p1487_p13 = pnand %p1181_p12, %p35_p10 }
  0x13   : > { %s1151_s16 = smul.u32 12, %s1386_s21  ;;  %s194_s22 = sshll.u32 %s1589_s4, 4  ;;  %s195_s22 = int_to_ptr.hbm [resolvable:$true] %s194_s22 }
  0x14   : > { %s211_s28 = scalar_lea.vmem [#allocation2], %s1150_s14  ;;  %s1498_s8 = scalar_lea.sflag [#allocation3], %s207_s12 }
  0x15   : > { %s216_s27 = scalar_lea.hbm %s1585_s0, %s1151_s16  ;;  %s220_s30 = sshll.u32 %s211_s28, 4  ;;  %s221_s30 = int_to_ptr.vmem [resolvable:$true] %s220_s30 }
  0x16   : > { %s218_s6 = sshll.u32 %s216_s27, 4  ;;  %p1254_p2 = pneg %p1487_p13  ;;  %s219_s6 = int_to_ptr.hbm [resolvable:$true] %s218_s6 }
  0x17   : > { %s1250_s9 = sshra.s32 %s219_s6, 4  ;;  %s1257_s14 = scalar_lea.hbm %s1585_s0, 24  ;;  %s1251_s9 = int_to_ptr.hbm [resolvable:$true] %s1250_s9 }
  0x18   : > { %s1252_s13 = scalar_lea.hbm %s1251_s9, 12  ;;  %p1258_p7 = scmp.lt.s32.totalorder %s1251_s9, %s1585_s0 }
  0x19   : > { %p1253_p0 = scmp.ne.s32.totalorder %s1251_s9, %s1252_s13  ;;  %p1259_p8 = scmp.lt.s32.totalorder %s1257_s14, %s1252_s13 }
  0x1b   : > { %p1255_p4 = pnand %p1254_p2, %p1253_p0  ;;  %p1260_p9 = por %p1259_p8, %p1258_p7 }
  0x1d   : > { %p1256_p6 = pneg %p1255_p4 }
  0x1f   : > { %p1261_p10 = pnand %p1260_p9, %p1256_p6 }
  0x21   : > { %1264 = shalt.err (!%p1261_p10)
}
  0x22   : > { %1175 = dma.hbm_to_vmem [thread:$0]  (!%p1487_p13), %s219_s6, 192, %s221_s30, %s1498_s8  }
  0x23   : > { %s1391_s12 = smov [#allocation7]   ;;  %s233_s17 = scalar_lea.hbm %s1587_s2, %s1386_s21 }
  0x24   : > { %s196_s24 = sshll.u32 %s1391_s12, 4  ;;  %s235_s9 = sshll.u32 %s233_s17, 4  ;;  %s197_s24 = int_to_ptr.vmem [resolvable:$true] %s196_s24  ;;  %s236_s9 = int_to_ptr.hbm [resolvable:$true] %s235_s9 }
  0x25   : > { %1171 = dma.hbm_to_vmem [thread:$0]  (!%p1457_p5), %s195_s22, 64, %s197_s24, [#allocation5]  }
  0x26   : > { %s1596_s13 = sand.u32 1, %s1382_s20   ;;  %s1310_s18 = sshra.s32 %s236_s9, 4  ;;  %s1311_s18 = int_to_ptr.hbm [resolvable:$true] %s1310_s18 }
  0x27   : > { %s230_s16 = scalar_lea.vmem [#allocation6], %s1596_s13  ;;  %s1312_s23 = scalar_lea.hbm %s1311_s18, 1 }
  0x28   : > { %s237_s14 = sshll.u32 %s230_s16, 4  ;;  %p1313_p12 = scmp.ne.s32.totalorder %s1311_s18, %s1312_s23  ;;  %s238_s14 = int_to_ptr.vmem [resolvable:$true] %s237_s14 }
  0x29   : > { %s1317_s21 = scalar_lea.hbm %s1587_s2, 2  ;;  %p1318_p5 = scmp.lt.s32.totalorder %s1311_s18, %s1587_s2 }
  0x2a   : > { %p1315_p0 = pnand %p1313_p12, %p1254_p2  ;;  %p1319_p6 = scmp.lt.s32.totalorder %s1317_s21, %s1312_s23 }
  0x2c   : > { %p1316_p4 = pneg %p1315_p0  ;;  %p1320_p7 = por %p1319_p6, %p1318_p5 }
  0x2e   : > { %p1321_p8 = pnand %p1320_p7, %p1316_p4 }
  0x30   : > { %1324 = shalt.err (!%p1321_p8)
}
  0x31   : > { %1178 = dma.hbm_to_vmem [thread:$0]  (!%p1487_p13), %s236_s9, 16, %s238_s14, %s1498_s8  }
  0x32   : > { %246 = sbr.rel (%p1449_p3) target bundleno = 262 (0x106), region = 40  ;;  %s248_s22 = sand.u32 (!%p1449_p3), 1, %s1444_s25  }
  0x33   : > { %s250_s24 = sand.u32 (!%p1449_p3), 1, %s1378_s19   ;;  %s249_s28 = scalar_lea.sflag (!%p1449_p3), [#allocation3], %s248_s22 }
  0x34   : > { %s1538_s27 = smul.u32 (!%p1449_p3), 12, %s250_s24 }
  0x36   : > { %s252_s17 = scalar_lea.vmem (!%p1449_p3), [#allocation2], %s1538_s27 }
  0x37   : > { %1357 = dma.done.wait (%p1478_p11), %s249_s28, 192  }
  0x38   : > { %1359 = vsyncadd (%p1478_p11), %s249_s28, 4294967104 }
  0x39   : > { %1361 = dma.done.wait (%p40_p1), [#allocation5], 6144  }
  0x3a   : > { %1363 = vsyncadd (%p40_p1), [#allocation5], 4294961152  ;;  %s1549_s26 = scalar_lea.vmem [#allocation6], %s250_s24 }
  0x3b   : > { %1365 = dma.done.wait (%p1478_p11), %s249_s28, 16  }
  0x3c   : > { %1367 = vsyncadd (%p1478_p11), %s249_s28, 4294967280 }
  0x3d   : > { %1369 = dma.done.wait (%p40_p1), [#allocation5], 64  }
  0x3e   : > { %1371 = vsyncadd (%p40_p1), [#allocation5], 4294967232  ;;  %v1109_v0 = vld [vmem:[#allocation4 + $0x38] sm:$0xff]  ;;  %v1108_v2 = vld [vmem:[#allocation4 + $0x30] sm:$0xff]  ;;  %p302_p1 = scmp.lt.s32.totalorder %s1444_s25, 1  ;;  %vm795_vm0 = vcmask 1040384  }
  0x3f   : > { %v1117_v1 = vld [vmem:[#allocation4 + $0x78] sm:$0xff]  ;;  %709 = vmatpush.bf16.msra.mxu0 %v1109_v0  ;;  %v1116_v3 = vld [vmem:[#allocation4 + $0x70] sm:$0xff]  ;;  %v1107_v8 = vld [vmem:[#allocation4 + $0x28] sm:$0xff] }
  0x40   : > { %722 = vmatpush.bf16.msra.mxu1 %v1117_v1  ;;  %v1125_v4 = vld [vmem:[#allocation4 + $0xb8] sm:$0xff]  ;;  %v1124_v6 = vld [vmem:[#allocation4 + $0xb0] sm:$0xff]  ;;  %v1115_v9 = vld [vmem:[#allocation4 + $0x68] sm:$0xff]  ;;  %s1602_s25 = smov (!%p302_p1, %s1444_s25), 1 }
  0x41   : > { %v1133_v5 = vld [vmem:[#allocation4 + $0xf8] sm:$0xff]  ;;  %735 = vmatpush.bf16.msra.mxu2 %v1125_v4  ;;  %v1132_v7 = vld [vmem:[#allocation4 + $0xf0] sm:$0xff]  ;;  %v1123_v10 = vld [vmem:[#allocation4 + $0xa8] sm:$0xff]  ;;  %s907_s8 = sshll.u32 %s1602_s25, 3 }
  0x42   : > { %748 = vmatpush.bf16.msra.mxu3 %v1133_v5  ;;  %v1131_v11 = vld [vmem:[#allocation4 + $0xe8] sm:$0xff]  ;;  %v1106_v12 = vld [vmem:[#allocation4 + $0x20] sm:$0xff]  ;;  %v1105_v17 = vld [vmem:[#allocation4 + $0x18] sm:$0xff]  ;;  %s305_s16 = scalar_lea.vmem %s1590_s5, %s907_s8 }
  0x43   : > { %710 = vmatpush.bf16.msra.mxu0 %v1108_v2  ;;  %v1114_v13 = vld [vmem:[#allocation4 + $0x60] sm:$0xff]  ;;  %v306_v14 = vld [vmem:[%s252_s17] sm:$0xff]  ;;  %v307_v25 = vld [vmem:[%s252_s17 + $0x8] sm:$0xf] }
  0x44   : > { %723 = vmatpush.bf16.msra.mxu1 %v1116_v3  ;;  %v1122_v15 = vld [vmem:[#allocation4 + $0xa0] sm:$0xff]  ;;  %405 = vst [vmem:[#allocation1] ss:$4 sm:$0xff] %v306_v14  ;;  %v1113_v18 = vld [vmem:[#allocation4 + $0x58] sm:$0xff]  ;;  %v1104_v21 = vld [vmem:[#allocation4 + $0x10] sm:$0xff] }
  0x45   : > { %736 = vmatpush.bf16.msra.mxu2 %v1124_v6  ;;  %v1130_v16 = vld [vmem:[#allocation4 + $0xe0] sm:$0xff]  ;;  %v1121_v19 = vld [vmem:[#allocation4 + $0x98] sm:$0xff]  ;;  %v1112_v22 = vld [vmem:[#allocation4 + $0x50] sm:$0xff]  ;;  %408 = vst [vmem:[#allocation1 + $0x20] ss:$4 sm:$0xff] %v307_v25 }
  0x46   : > { %749 = vmatpush.bf16.msra.mxu3 %v1132_v7  ;;  %v1129_v20 = vld [vmem:[#allocation4 + $0xd8] sm:$0xff]  ;;  %v1120_v23 = vld [vmem:[#allocation4 + $0x90] sm:$0xff]  ;;  %v1103_v26 = vld [vmem:[#allocation4 + $0x8] sm:$0xff] }
  0x47   : > { %711 = vmatpush.bf16.msra.mxu0 %v1107_v8  ;;  %v1128_v24 = vld [vmem:[#allocation4 + $0xd0] sm:$0xff]  ;;  %v1111_v27 = vld [vmem:[#allocation4 + $0x48] sm:$0xff]  ;;  %v1102_v30 = vld [vmem:[#allocation4] sm:$0xff] }
  0x48   : > { %724 = vmatpush.bf16.msra.mxu1 %v1115_v9  ;;  %v1119_v28 = vld [vmem:[#allocation4 + $0x88] sm:$0xff]  ;;  %v1110_v31 = vld [vmem:[#allocation4 + $0x40] sm:$0xff]  ;;  %v1141_v32 = vld [vmem:[#allocation4 + $0x138] sm:$0xff] }
  0x49   : > { %737 = vmatpush.bf16.msra.mxu2 %v1123_v10  ;;  %v1127_v29 = vld [vmem:[#allocation4 + $0xc8] sm:$0xff]  ;;  %v1149_v33 = vld [vmem:[#allocation4 + $0x178] sm:$0xff]  ;;  %v1118_v34 = vld [vmem:[#allocation4 + $0x80] sm:$0xff] }
  0x4a   : > { %750 = vmatpush.bf16.msra.mxu3 %v1131_v11  ;;  %v1126_v35 = vld [vmem:[#allocation4 + $0xc0] sm:$0xff]  ;;  %v1140_v38 = vld [vmem:[#allocation4 + $0x130] sm:$0xff]  ;;  %v1139_v42 = vld [vmem:[#allocation4 + $0x128] sm:$0xff] }
  0x4b   : > { %712 = vmatpush.bf16.msra.mxu0 %v1106_v12  ;;  %v409_v36 = vld.sshfl [vmem:[#allocation1] sm:$0xff pattern:$0x73625140]  ;;  %v410_v37 = vld.sshfl [vmem:[#allocation1 + $0x8] sm:$0xff pattern:$0x73625140] }
  0x4c   : > { %725 = vmatpush.bf16.msra.mxu1 %v1114_v13  ;;  %v1148_v39 = vld [vmem:[#allocation4 + $0x170] sm:$0xff]  ;;  %v412_v41 = vld.sshfl [vmem:[#allocation1 + $0x18] sm:$0xff pattern:$0x73625140]  ;;  %v1147_v43 = vld [vmem:[#allocation4 + $0x168] sm:$0xff] }
  0x4d   : > { %738 = vmatpush.bf16.msra.mxu2 %v1122_v15  ;;  %v411_v40 = vld.sshfl [vmem:[#allocation1 + $0x10] sm:$0xff pattern:$0x73625140]  ;;  %v1138_v44 = vld [vmem:[#allocation4 + $0x120] sm:$0xff]  ;;  %v1137_v46 = vld [vmem:[#allocation4 + $0x118] sm:$0xff] }
  0x4e   : > { %751 = vmatpush.bf16.msra.mxu3 %v1130_v16  ;;  %v1146_v45 = vld [vmem:[#allocation4 + $0x160] sm:$0xff]  ;;  %v1145_v47 = vld [vmem:[#allocation4 + $0x158] sm:$0xff]  ;;  %v1136_v48 = vld [vmem:[#allocation4 + $0x110] sm:$0xff] }
  0x4f   : > { %713 = vmatpush.bf16.msra.mxu0 %v1105_v17  ;;  %v1144_v49 = vld [vmem:[#allocation4 + $0x150] sm:$0xff]  ;;  %v1135_v50 = vld [vmem:[#allocation4 + $0x108] sm:$0xff]  ;;  %v1134_v52 = vld [vmem:[#allocation4 + $0x100] sm:$0xff] }
  0x50   : > { %726 = vmatpush.bf16.msra.mxu1 %v1113_v18  ;;  %v1143_v51 = vld [vmem:[#allocation4 + $0x148] sm:$0xff]  ;;  %v1142_v53 = vld [vmem:[#allocation4 + $0x140] sm:$0xff] }
  0x51   : > { %739 = vmatpush.bf16.msra.mxu2 %v1121_v19  ;;  %v413_v54 = vld.sshfl [vmem:[#allocation1 + $0x20] sm:$0xff pattern:$0x73625140]  ;;  %v414_v55 = vld.sshfl [vmem:[#allocation1 + $0x28] sm:$0xff pattern:$0x73625140] }
  0x52   : > { %752 = vmatpush.bf16.msra.mxu3 %v1129_v20  ;;  %v787_v6 = vld [vmem:[#allocation7] sm:$0xf]  ;;  %v789_v7 = vld [vmem:[%s1549_s26] sm:$0x1] }
  0x53   : > { %714 = vmatpush.bf16.msra.mxu0 %v1104_v21  ;;  %v790_v8 = vld [vmem:[%s1588_s3] sm:$0x1] }
  0x54   : > { %727 = vmatpush.bf16.msra.mxu1 %v1112_v22  ;;  %v791_v11 = vadd.f32 %v790_v8, %v789_v7 }
  0x55   : > { %740 = vmatpush.bf16.msra.mxu2 %v1120_v23 }
  0x56   : > { %753 = vmatpush.bf16.msra.mxu3 %v1128_v24 }
  0x57   : > { %715 = vmatpush.bf16.msra.mxu0 %v1103_v26 }
  0x58   : > { %728 = vmatpush.bf16.msra.mxu1 %v1111_v27 }
  0x59   : > { %741 = vmatpush.bf16.msra.mxu2 %v1119_v28 }
  0x5a   : > { %754 = vmatpush.bf16.msra.mxu3 %v1127_v29 }
  0x5b   : > { %716 = vmatpush.bf16.msra.mxu0 %v1102_v30 }
  0x5c   : > { %729 = vmatpush.bf16.msra.mxu1 %v1110_v31 }
  0x5d   : > { %742 = vmatpush.bf16.msra.mxu2 %v1118_v34 }
  0x5e   : > { %755 = vmatpush.bf16.msra.mxu3 %v1126_v35  ;;  %717 = vmatmul.bf16.vlgmr.msra.gmra.mxu0 %v409_v36 }
  0x5f   : > { %761 = vmatpush.bf16.msrb.mxu0 %v1141_v32  ;;  %730 = vmatmul.bf16.vlgmr.msra.gmra.mxu1 %v410_v37 }
  0x60   : > { %774 = vmatpush.bf16.msrb.mxu1 %v1149_v33  ;;  %743 = vmatmul.bf16.vlgmr.msra.gmra.mxu2 %v411_v40 }
  0x61   : > { %756 = vmatmul.bf16.vlgmr.msra.gmra.mxu3 %v412_v41 }
  0x63   : > { %762 = vmatpush.bf16.msrb.mxu0 %v1140_v38 }
  0x64   : > { %775 = vmatpush.bf16.msrb.mxu1 %v1148_v39 }
  0x67   : > { %763 = vmatpush.bf16.msrb.mxu0 %v1139_v42 }
  0x68   : > { %776 = vmatpush.bf16.msrb.mxu1 %v1147_v43 }
  0x6b   : > { %764 = vmatpush.bf16.msrb.mxu0 %v1138_v44 }
  0x6c   : > { %777 = vmatpush.bf16.msrb.mxu1 %v1146_v45 }
  0x6f   : > { %765 = vmatpush.bf16.msrb.mxu0 %v1137_v46 }
  0x70   : > { %778 = vmatpush.bf16.msrb.mxu1 %v1145_v47 }
  0x73   : > { %766 = vmatpush.bf16.msrb.mxu0 %v1136_v48 }
  0x74   : > { %779 = vmatpush.bf16.msrb.mxu1 %v1144_v49 }
  0x77   : > { %767 = vmatpush.bf16.msrb.mxu0 %v1135_v50 }
  0x78   : > { %780 = vmatpush.bf16.msrb.mxu1 %v1143_v51 }
  0x7b   : > { %768 = vmatpush.bf16.msrb.mxu0 %v1134_v52 }
  0x7c   : > { %781 = vmatpush.bf16.msrb.mxu1 %v1142_v53 }
  0x7e   : > { %769 = vmatmul.bf16.vlgmr.msrb.gmra.mxu0 %v413_v54 }
  0x7f   : > { %782 = vmatmul.bf16.vlgmr.msrb.gmra.mxu1 %v414_v55 }
  0xdb   : > { %v718_v56 = vpop.f32.mrf.mxu0 }
  0xdc   : > { %v731_v57 = vpop.f32.mrf.mxu1 }
  0xdd   : > { %v732_v0 = vadd.f32 %v731_v57, %v718_v56 }
  0xe3   : > { %v720_v58 = vpop.f32.mrf.mxu0  ;;  %v744_v60 = vpop.f32.mrf.mxu2 }
  0xe4   : > { %v733_v59 = vpop.f32.mrf.mxu1  ;;  %v757_v61 = vpop.f32.mrf.mxu3  ;;  %v745_v1 = vadd.f32 %v744_v60, %v732_v0 }
  0xe6   : > { %v758_v2 = vadd.f32 %v757_v61, %v745_v1 }
  0xeb   : > { %v746_v62 = vpop.f32.mrf.mxu2 }
  0xec   : > { %v759_v63 = vpop.f32.mrf.mxu3 }
  0xfb   : > { %v770_v3 = vpop.f32.mrf.mxu0 }
  0xfc   : > { %v783_v4 = vpop.f32.mrf.mxu1  ;;  %v771_v5 = vadd.f32 %v770_v3, %v758_v2 }
  0xfe   : > { %v784_v9 = vadd.f32 %v783_v4, %v771_v5 }
 0x100   : > { %v788_v10 = vadd.f32 %v787_v6, %v784_v9 }
 0x102   : > { %v793_v12 = vrot.slane %v788_v10, 7 }
 0x103   : > { %v772_v13 = vpop.f32.mrf.mxu0 }
 0x104   : > { %v785_v14 = vpop.f32.mrf.mxu1  ;;  %v796_v15 = vsel %vm795_vm0, %v791_v11, %v793_v12 }
 0x105   : > { %797 = vst [vmem:[%s305_s16] sm:$0x1f] %v796_v15 }
 0x106 PF: > { %p16_p3 = scmp.ge.s32.totalorder %s1464_s7, 4   ;;  %s1597_s18 = smov %s1378_s19 }
 0x107   : > { %s1598_s19 = smov %s1382_s20  ;;  %s1599_s20 = smov %s1474_s10 }
 0x108   : > { %s1600_s21 = smov %s1464_s7  ;;  %18 = sbr.rel (!%p16_p3) target bundleno = 4 (0x4), region = 100 }
 0x10d   :  { %817 = vsyncpa [#allocation3], 1 }
 0x10e   :  { %819 = vsyncpa [#allocation3 + $0x1], 1 }
 0x10f   :  { %820 = vsyncpa [#allocation5], 1 }

</bundles_post_ra>
